<compile_context>
chip_gen: v7x
topology: tpu7x:2x2x1
jax: 0.10.0
libtpu: 0.0.40
codegen_flags: <defaults>
</compile_context>

<pallas_src>
import math
import functools

import jax
import jax.numpy as jnp
from jax.experimental import pallas as pl
from jax.experimental.pallas import tpu as pltpu


def emsm_t_kernel(x_ref, pe_ref, wqkv_ref, wo_ref, bo_ref, o_ref, pooled_acc,
                  *, num_heads, scale, inv_hw):
    # x_ref    : (c, t, hw_tile)  native channel-major slab for this batch / hw tile
    # pe_ref   : (t, c)           sinusoidal positional encoding
    # wqkv_ref : (3H, c, d)       per-head q/k/v weights, batched over (q,k,v)xheads
    # wo_ref   : (H, c, d)        per-head output-projection weights
    # bo_ref   : (c, 1)           output-projection bias (channel-major)
    # o_ref    : (c, t)           output slab (native [b, c, t] layout)
    # pooled_acc : VMEM (c, t) f32 accumulator for the spatial sum
    j = pl.program_id(1)

    @pl.when(j == 0)
    def _():
        pooled_acc[...] = jnp.zeros_like(pooled_acc)

    # accumulate the spatial sum for this hw tile (adaptive_avg_pool3d numerator)
    pooled_acc[...] += jnp.sum(x_ref[...].astype(jnp.float32), axis=-1)

    @pl.when(j == pl.num_programs(1) - 1)
    def _():
        c, t = pooled_acc.shape
        h = num_heads

        # mean over (h, w) via constant multiply, flip to time-major, add PE.
        x_enc = pooled_acc[...].T * inv_hw + pe_ref[...]               # (t, c)

        # fused q/k/v projection, batched over 3*H heads (single batched matmul)
        xb = jnp.broadcast_to(x_enc[None], (3 * h, t, c))              # (3H, t, c)
        qkv = jnp.einsum('btc,bcd->btd', xb, wqkv_ref[...],
                         preferred_element_type=jnp.float32)           # (3H, t, d)
        q3 = qkv[0:h]                                                  # (H, t, d)
        k3 = qkv[h:2 * h]
        v3 = qkv[2 * h:3 * h]

        # scaled dot-product attention, batched over heads
        sim = jnp.einsum('hid,hjd->hij', q3, k3,
                         preferred_element_type=jnp.float32) * scale   # (H, t, t)
        sim = sim - jnp.max(sim, axis=-1, keepdims=True)
        p = jnp.exp(sim)
        attn = p * pl.reciprocal(jnp.sum(p, axis=-1, keepdims=True), approx=True)
        out3 = jnp.einsum('hij,hjd->hid', attn, v3,
                          preferred_element_type=jnp.float32)          # (H, t, d)

        # output projection fused with the head-merge, produced channel-major
        partial = jnp.einsum('hod,hid->hoi', wo_ref[...], out3,
                             preferred_element_type=jnp.float32)       # (H, c, t)
        proj_ct = jnp.sum(partial, axis=0) + bo_ref[...]               # (c, t)
        o_ref[...] = proj_ct.astype(o_ref.dtype)


def make_positional_encoding(t, c):
    position = jnp.arange(t, dtype=jnp.float32)[:, None]
    div_term = jnp.exp(jnp.arange(0, c, 2, dtype=jnp.float32) * (-math.log(10000.0) / c))
    pe = jnp.zeros((t, c), jnp.float32)
    pe = pe.at[:, 0::2].set(jnp.sin(position * div_term))
    pe = pe.at[:, 1::2].set(jnp.cos(position * div_term))
    return pe


def _pick_hw_tile(hw, c, t, max_block_bytes=4 * 1024 * 1024):
    """Largest 128-multiple divisor of hw whose (c, t, hw_tile) f32 block fits the cap."""
    bytes_per_hw = c * t * 4
    cap = max(128, (max_block_bytes // bytes_per_hw) // 128 * 128)
    if hw > cap and hw % 128 == 0:
        for cand in range(cap, 127, -128):
            if hw % cand == 0:
                return cand
        return 128
    # small spatial extent (or not 128-divisible): take it whole
    return hw


def emsm_t_forward(x, params, num_heads):
    b, c, t, h, w = x.shape
    hw = h * w
    d = c // num_heads
    scale = d ** -0.5

    # native layout: only merge the spatial dims (free reshape, NO transpose)
    x_r = x.reshape(b, c, t, hw)

    hw_tile = _pick_hw_tile(hw, c, t)
    n_hw = hw // hw_tile

    pe = make_positional_encoding(t, c)                                # (t, c)

    # Host-side (free) weight re-packs.
    # Linear: y = x @ W.T with W = (out, in).  Per-head, head-major channels:
    #   w_h[h, ci, dd] = W[h*d + dd, ci]
    def per_head(wt):                                                  # (c, c) -> (H, c, d)
        return jnp.transpose(wt.reshape(num_heads, d, c), (0, 2, 1))

    wqkv_h = jnp.concatenate([per_head(params["wq"]),
                              per_head(params["wk"]),
                              per_head(params["wv"])], axis=0)         # (3H, c, d)
    # output projection, per head: wo_h[h, o, dd] = Wo[o, h*d + dd]
    wo_h = jnp.transpose(params["wo"].reshape(c, num_heads, d), (1, 0, 2))  # (H, c, d)
    bo = params["bo"].reshape(c, 1)

    kernel = functools.partial(emsm_t_kernel, num_heads=num_heads,
                               scale=scale, inv_hw=1.0 / hw)

    out_bct = pl.pallas_call(
        kernel,
        out_shape=jax.ShapeDtypeStruct((b, c, t), jnp.float32),
        grid_spec=pltpu.PrefetchScalarGridSpec(
            num_scalar_prefetch=0,
            grid=(b, n_hw),
            in_specs=[
                pl.BlockSpec((None, c, t, hw_tile), lambda i, j: (i, 0, 0, j)),  # x
                pl.BlockSpec((t, c), lambda i, j: (0, 0)),                       # pe
                pl.BlockSpec((3 * num_heads, c, d), lambda i, j: (0, 0, 0)),     # Wqkv
                pl.BlockSpec((num_heads, c, d), lambda i, j: (0, 0, 0)),         # Wo
                pl.BlockSpec((c, 1), lambda i, j: (0, 0)),                       # bias
            ],
            out_specs=pl.BlockSpec((None, c, t), lambda i, j: (i, 0, 0)),
            scratch_shapes=[pltpu.VMEM((c, t), jnp.float32)],
        ),
        compiler_params=pltpu.CompilerParams(
            dimension_semantics=("parallel", "arbitrary"),
            vmem_limit_bytes=32 * 1024 * 1024,
        ),
    )(x_r, pe, wqkv_h, wo_h, bo)

    return out_bct                                                     # already (b, c, t)


def emsm_t_reference(x, params, num_heads):
    """Pure-JAX reference mirroring the PyTorch forward."""
    b, c, t, h, w = x.shape
    d = c // num_heads
    pooled = x.mean(axis=(3, 4))                     # [b, c, t]
    xt = jnp.transpose(pooled, (0, 2, 1))            # [b, t, c]
    xe = xt + make_positional_encoding(t, c)[None]
    q = xe @ params["wq"].T
    k = xe @ params["wk"].T
    v = xe @ params["wv"].T

    def split(a):  # 'b n (h d) -> (b h) n d'
        return a.reshape(b, t, num_heads, d).transpose(0, 2, 1, 3).reshape(b * num_heads, t, d)

    q, k, v = map(split, (q, k, v))
    sim = jnp.einsum('bid,bjd->bij', q, k) * d ** -0.5
    attn = jax.nn.softmax(sim, axis=-1)
    o = jnp.einsum('bij,bjd->bid', attn, v)
    o = o.reshape(b, num_heads, t, d).transpose(0, 2, 1, 3).reshape(b, t, c)
    o = o @ params["wo"].T + params["bo"]
    return jnp.transpose(o, (0, 2, 1))               # [b, c, t]


if __name__ == "__main__":
    b, c, t, h, w = 2, 32, 8, 16, 16     # dim = c = 32
    num_heads = 4

    key = jax.random.PRNGKey(0)
    kx, kq, kk, kv, ko, kb = jax.random.split(key, 6)
    x = jax.random.normal(kx, (b, c, t, h, w), jnp.float32)

    bound = 1.0 / math.sqrt(c)           # deterministic, Linear-style init
    params = {
        "wq": jax.random.uniform(kq, (c, c), jnp.float32, -bound, bound),
        "wk": jax.random.uniform(kk, (c, c), jnp.float32, -bound, bound),
        "wv": jax.random.uniform(kv, (c, c), jnp.float32, -bound, bound),
        "wo": jax.random.uniform(ko, (c, c), jnp.float32, -bound, bound),
        "bo": jax.random.uniform(kb, (c,), jnp.float32, -bound, bound),
    }

    out = emsm_t_forward(x, params, num_heads)
    out = jax.block_until_ready(out)
    assert out.shape == (b, c, t), out.shape

    ref = emsm_t_reference(x, params, num_heads)
    assert jnp.allclose(out, ref, rtol=5e-3, atol=5e-3), float(jnp.max(jnp.abs(out - ref)))

    print("KERNEL_OK")
</pallas_src>

<mosaic_0001>
module attributes {stable_mosaic.version = 11 : i64} {
  func.func @emsm_t_kernel(%arg0: i32, %arg1: i32, %arg2: memref<1x32x8x256xf32, #tpu.memory_space<vmem>>, %arg3: memref<8x32xf32, #tpu.memory_space<vmem>>, %arg4: memref<12x32x8xf32, #tpu.memory_space<vmem>>, %arg5: memref<4x32x8xf32, #tpu.memory_space<vmem>>, %arg6: memref<32x1xf32, #tpu.memory_space<vmem>>, %arg7: memref<1x32x8xf32, #tpu.memory_space<vmem>>, %arg8: memref<32x8xf32, #tpu.memory_space<vmem>>) attributes {dimension_semantics = [#tpu.dimension_semantics<parallel>, #tpu.dimension_semantics<arbitrary>], iteration_bounds = array<i64: 2, 1>, scalar_prefetch = 0 : i64, scratch_operands = 1 : i64, tpu.core_type = #tpu.core_type<tc>, window_params = [{transform_indices = @transform_0, window_bounds = array<i64: 1, 32, 8, 256>}, {pipeline_mode = #tpu.pipeline_mode<synchronous>, transform_indices = @transform_1, window_bounds = array<i64: 8, 32>}, {pipeline_mode = #tpu.pipeline_mode<synchronous>, transform_indices = @transform_2, window_bounds = array<i64: 12, 32, 8>}, {pipeline_mode = #tpu.pipeline_mode<synchronous>, transform_indices = @transform_3, window_bounds = array<i64: 4, 32, 8>}, {pipeline_mode = #tpu.pipeline_mode<synchronous>, transform_indices = @transform_4, window_bounds = array<i64: 32, 1>}, {transform_indices = @transform_5, window_bounds = array<i64: 1, 32, 8>}]} {
    %c0_i32 = arith.constant 0 : i32
    %0 = arith.cmpi eq, %arg1, %c0_i32 : i32
    %1 = arith.extui %0 : i1 to i32
    %c0_i32_0 = arith.constant 0 : i32
    %2 = arith.cmpi ne, %1, %c0_i32_0 : i32
    scf.if %2 {
      %cst_10 = arith.constant 0.000000e+00 : f32
      %12 = vector.broadcast %cst_10 : f32 to vector<32x8xf32>
      %c0_11 = arith.constant 0 : index
      %c0_12 = arith.constant 0 : index
      %13 = vector.load %arg8[%c0_11, %c0_12] : memref<32x8xf32, #tpu.memory_space<vmem>>, vector<32x8xf32>
      tpu.vector_store %arg8[%c0_11, %c0_12], %12 {strides = array<i32>} : memref<32x8xf32, #tpu.memory_space<vmem>>, vector<32x8xf32>,
    } else {
    }
    %c0 = arith.constant 0 : index
    %c0_1 = arith.constant 0 : index
    %3 = vector.load %arg8[%c0, %c0_1] : memref<32x8xf32, #tpu.memory_space<vmem>>, vector<32x8xf32>
    %c0_2 = arith.constant 0 : index
    %c0_3 = arith.constant 0 : index
    %c0_4 = arith.constant 0 : index
    %c0_5 = arith.constant 0 : index
    %4 = vector.load %arg2[%c0_2, %c0_3, %c0_4, %c0_5] : memref<1x32x8x256xf32, #tpu.memory_space<vmem>>, vector<1x32x8x256xf32>
    %5 = vector.shape_cast %4 : vector<1x32x8x256xf32> to vector<32x8x256xf32>
    %cst = arith.constant dense<0.000000e+00> : vector<32x8xf32>
    %6 = vector.multi_reduction <add>, %5, %cst [2] : vector<32x8x256xf32> to vector<32x8xf32>
    %7 = arith.addf %3, %6 : vector<32x8xf32>
    %c0_6 = arith.constant 0 : index
    %c0_7 = arith.constant 0 : index
    %8 = vector.load %arg8[%c0_6, %c0_7] : memref<32x8xf32, #tpu.memory_space<vmem>>, vector<32x8xf32>
    tpu.vector_store %arg8[%c0_6, %c0_7], %7 {strides = array<i32>} : memref<32x8xf32, #tpu.memory_space<vmem>>, vector<32x8xf32>,
    %c0_i32_8 = arith.constant 0 : i32
    %9 = arith.cmpi eq, %arg1, %c0_i32_8 : i32
    %10 = arith.extui %9 : i1 to i32
    %c0_i32_9 = arith.constant 0 : i32
    %11 = arith.cmpi ne, %10, %c0_i32_9 : i32
    scf.if %11 {
      %c0_10 = arith.constant 0 : index
      %c0_11 = arith.constant 0 : index
      %12 = vector.load %arg8[%c0_10, %c0_11] : memref<32x8xf32, #tpu.memory_space<vmem>>, vector<32x8xf32>
      %13 = tpu.transpose %12, [1, 0] : vector<32x8xf32> -> vector<8x32xf32>
      %cst_12 = arith.constant 3.906250e-03 : f32
      %14 = vector.broadcast %cst_12 : f32 to vector<8x32xf32>
      %15 = arith.mulf %13, %14 : vector<8x32xf32>
      %c0_13 = arith.constant 0 : index
      %c0_14 = arith.constant 0 : index
      %16 = vector.load %arg3[%c0_13, %c0_14] : memref<8x32xf32, #tpu.memory_space<vmem>>, vector<8x32xf32>
      %17 = arith.addf %15, %16 : vector<8x32xf32>
      %18 = vector.shape_cast %17 : vector<8x32xf32> to vector<1x8x32xf32>
      %19 = vector.shape_cast %18 : vector<1x8x32xf32> to vector<1x8x32xf32>
      %20 = vector.broadcast %19 : vector<1x8x32xf32> to vector<12x8x32xf32>
      %c0_15 = arith.constant 0 : index
      %c0_16 = arith.constant 0 : index
      %c0_17 = arith.constant 0 : index
      %21 = vector.load %arg4[%c0_15, %c0_16, %c0_17] : memref<12x32x8xf32, #tpu.memory_space<vmem>>, vector<12x32x8xf32>
      "tpu.trace_start"() <{level = 10 : i32, message = "btc,bcd->btd"}> : () -> ()
      %cst_18 = arith.constant dense<0.000000e+00> : vector<12x8x8xf32>
      %22 = tpu.matmul %20, %21, %cst_18 {dimension_numbers = #tpu.dot_dimension_numbers<[2], [1], [1], [2], [0, 0, 0, 1, 1, 2], [0], [0]>} : vector<12x8x32xf32>, vector<12x32x8xf32>, vector<12x8x8xf32> -> vector<12x8x8xf32>
      "tpu.trace_stop"() : () -> ()
      %23 = vector.extract_strided_slice %22 {offsets = [0, 0, 0], sizes = [4, 8, 8], strides = [1, 1, 1]} : vector<12x8x8xf32> to vector<4x8x8xf32>
      %24 = vector.extract_strided_slice %22 {offsets = [4, 0, 0], sizes = [4, 8, 8], strides = [1, 1, 1]} : vector<12x8x8xf32> to vector<4x8x8xf32>
      %25 = vector.extract_strided_slice %22 {offsets = [8, 0, 0], sizes = [4, 8, 8], strides = [1, 1, 1]} : vector<12x8x8xf32> to vector<4x8x8xf32>
      "tpu.trace_start"() <{level = 10 : i32, message = "hid,hjd->hij"}> : () -> ()
      %cst_19 = arith.constant dense<0.000000e+00> : vector<4x8x8xf32>
      %26 = tpu.matmul %23, %24, %cst_19 {dimension_numbers = #tpu.dot_dimension_numbers<[2], [2], [1], [1], [0, 0, 0, 1, 1, 1], [0], [0]>} : vector<4x8x8xf32>, vector<4x8x8xf32>, vector<4x8x8xf32> -> vector<4x8x8xf32>
      "tpu.trace_stop"() : () -> ()
      %cst_20 = arith.constant 0.353553385 : f32
      %27 = vector.broadcast %cst_20 : f32 to vector<4x8x8xf32>
      %28 = arith.mulf %26, %27 : vector<4x8x8xf32>
      %cst_21 = arith.constant dense<0xFF800000> : vector<4x8xf32>
      %29 = vector.multi_reduction <maximumf>, %28, %cst_21 [2] : vector<4x8x8xf32> to vector<4x8xf32>
      %30 = vector.shape_cast %29 : vector<4x8xf32> to vector<4x8x1xf32>
      %31 = vector.broadcast %30 : vector<4x8x1xf32> to vector<4x8x8xf32>
      %32 = arith.subf %28, %31 : vector<4x8x8xf32>
      %33 = math.exp %32 : vector<4x8x8xf32>
      %cst_22 = arith.constant dense<0.000000e+00> : vector<4x8xf32>
      %34 = vector.multi_reduction <add>, %33, %cst_22 [2] : vector<4x8x8xf32> to vector<4x8xf32>
      %35 = vector.shape_cast %34 : vector<4x8xf32> to vector<4x8x1xf32>
      %36 = tpu.reciprocal %35 {approx = true} : vector<4x8x1xf32> -> vector<4x8x1xf32>
      %37 = vector.broadcast %36 : vector<4x8x1xf32> to vector<4x8x8xf32>
      %38 = arith.mulf %33, %37 : vector<4x8x8xf32>
      "tpu.trace_start"() <{level = 10 : i32, message = "hij,hjd->hid"}> : () -> ()
      %cst_23 = arith.constant dense<0.000000e+00> : vector<4x8x8xf32>
      %39 = tpu.matmul %38, %25, %cst_23 {dimension_numbers = #tpu.dot_dimension_numbers<[2], [1], [1], [2], [0, 0, 0, 1, 1, 2], [0], [0]>} : vector<4x8x8xf32>, vector<4x8x8xf32>, vector<4x8x8xf32> -> vector<4x8x8xf32>
      "tpu.trace_stop"() : () -> ()
      %c0_24 = arith.constant 0 : index
      %c0_25 = arith.constant 0 : index
      %c0_26 = arith.constant 0 : index
      %40 = vector.load %arg5[%c0_24, %c0_25, %c0_26] : memref<4x32x8xf32, #tpu.memory_space<vmem>>, vector<4x32x8xf32>
      "tpu.trace_start"() <{level = 10 : i32, message = "hod,hid->hoi"}> : () -> ()
      %cst_27 = arith.constant dense<0.000000e+00> : vector<4x32x8xf32>
      %41 = tpu.matmul %40, %39, %cst_27 {dimension_numbers = #tpu.dot_dimension_numbers<[2], [2], [1], [1], [0, 0, 0, 1, 1, 1], [0], [0]>} : vector<4x32x8xf32>, vector<4x8x8xf32>, vector<4x32x8xf32> -> vector<4x32x8xf32>
      "tpu.trace_stop"() : () -> ()
      %cst_28 = arith.constant dense<0.000000e+00> : vector<32x8xf32>
      %42 = vector.multi_reduction <add>, %41, %cst_28 [0] : vector<4x32x8xf32> to vector<32x8xf32>
      %c0_29 = arith.constant 0 : index
      %c0_30 = arith.constant 0 : index
      %43 = vector.load %arg6[%c0_29, %c0_30] : memref<32x1xf32, #tpu.memory_space<vmem>>, vector<32x1xf32>
      %44 = vector.broadcast %43 : vector<32x1xf32> to vector<32x8xf32>
      %45 = arith.addf %42, %44 : vector<32x8xf32>
      %c0_31 = arith.constant 0 : index
      %c0_32 = arith.constant 0 : index
      %c0_33 = arith.constant 0 : index
      %46 = vector.load %arg7[%c0_31, %c0_32, %c0_33] : memref<1x32x8xf32, #tpu.memory_space<vmem>>, vector<1x32x8xf32>
      %47 = vector.shape_cast %46 : vector<1x32x8xf32> to vector<32x8xf32>
      %48 = vector.shape_cast %45 : vector<32x8xf32> to vector<1x32x8xf32>
      tpu.vector_store %arg7[%c0_31, %c0_32, %c0_33], %48 {strides = array<i32>} : memref<1x32x8xf32, #tpu.memory_space<vmem>>, vector<1x32x8xf32>,
    } else {
    }
    return
  }
  func.func @transform_0(%arg0: i32, %arg1: i32) -> (i32, i32, i32, i32) {
    %c0_i32 = arith.constant 0 : i32
    %c0_i32_0 = arith.constant 0 : i32
    %c0_i32_1 = arith.constant 0 : i32
    return %arg0, %c0_i32, %c0_i32_0, %arg1 : i32, i32, i32, i32
  }
  func.func @transform_1(%arg0: i32, %arg1: i32) -> (i32, i32) {
    %c0_i32 = arith.constant 0 : i32
    %c0_i32_0 = arith.constant 0 : i32
    %c0_i32_1 = arith.constant 0 : i32
    return %c0_i32, %c0_i32_0 : i32, i32
  }
  func.func @transform_2(%arg0: i32, %arg1: i32) -> (i32, i32, i32) {
    %c0_i32 = arith.constant 0 : i32
    %c0_i32_0 = arith.constant 0 : i32
    %c0_i32_1 = arith.constant 0 : i32
    %c0_i32_2 = arith.constant 0 : i32
    return %c0_i32, %c0_i32_0, %c0_i32_1 : i32, i32, i32
  }
  func.func @transform_3(%arg0: i32, %arg1: i32) -> (i32, i32, i32) {
    %c0_i32 = arith.constant 0 : i32
    %c0_i32_0 = arith.constant 0 : i32
    %c0_i32_1 = arith.constant 0 : i32
    %c0_i32_2 = arith.constant 0 : i32
    return %c0_i32, %c0_i32_0, %c0_i32_1 : i32, i32, i32
  }
  func.func @transform_4(%arg0: i32, %arg1: i32) -> (i32, i32) {
    %c0_i32 = arith.constant 0 : i32
    %c0_i32_0 = arith.constant 0 : i32
    %c0_i32_1 = arith.constant 0 : i32
    return %c0_i32, %c0_i32_0 : i32, i32
  }
  func.func @transform_5(%arg0: i32, %arg1: i32) -> (i32, i32, i32) {
    %c0_i32 = arith.constant 0 : i32
    %c0_i32_0 = arith.constant 0 : i32
    %c0_i32_1 = arith.constant 0 : i32
    return %arg0, %c0_i32, %c0_i32_0 : i32, i32, i32
  }
}

</mosaic_0001>

<bundles_post_ra>
// kernel: tpu_custom_call.1
= control target key start
LH: loop header
LB: loop body
LE: loop exit
PB: predicated region body
PF: predicated region fallthrough
CT: control target
= control target key end

     0   :  { %10 = vsyncpa [#allocation4], 0  ;;  %s4051_s0 = inlined_call_operand.hbm [shape: f32[2,32,8,256], index: 0, kind: input, shape index: {}]   ;;  %s4052_s1 = inlined_call_operand.vmem [shape: f32[8,32], index: 1, kind: input, shape index: {}]   ;;  %s4053_s2 = inlined_call_operand.vmem [shape: f32[12,32,8], index: 2, kind: input, shape index: {}]   ;;  %s4054_s3 = inlined_call_operand.vmem [shape: f32[4,32,8], index: 3, kind: input, shape index: {}]   ;;  %s4055_s4 = inlined_call_operand.vmem [shape: f32[32,1], index: 4, kind: input, shape index: {}]   ;;  %s4056_s5 = inlined_call_operand.vmem [shape: f32[2,32,8], index: 5, kind: output, shape index: {}]  }
   0x1   :  { %12 = vsyncpa [#allocation4 + $0x1], 0  ;;  %s3406_s18 = smov 0   ;;  %s3408_s19 = smov 0  }
   0x2   :  { %s3410_s20 = smov 0   ;;  %s3412_s21 = smov 0  }
   0x3   :  { %s3414_s22 = smov 0   ;;  %s3416_s23 = smov 0  }
   0x4 LB: > { %s2777_s24 = sadd.s32 4294967295, %s3367_s23   ;;  %s30_s25 = sadd.s32 1, %s3363_s22  ;;  %s3367_s23 = sphi %s3416_s23, %s18_s23   ;;  %s3363_s22 = sphi %s3414_s22, %s4064_s22   ;;  %s3359_s21 = sphi %s3412_s21, %s4063_s21   ;;  %s3355_s20 = sphi %s3410_s20, %s4062_s20   ;;  %s3351_s19 = sphi %s3408_s19, %s4061_s19   ;;  %s3347_s18 = sphi %s3406_s18, %s4060_s18  }
   0x5   : > { %p32_p0 = scmp.ge.s32.totalorder %s30_s25, 2  ;;  %s39_s26 = sadd.s32 1, %s3355_s20 }
   0x6   : > { %p46_p1 = scmp.ne.s32.totalorder %s3355_s20, %s3351_s19  ;;  %p47_p2 = scmp.eq.s32.totalorder %s3367_s23, 0 }
   0x7   : > { %s4066_s25 = smov (%p32_p0, %s30_s25), 0  ;;  %p52_p4 = scmp.ne.s32.totalorder %s3351_s19, %s3347_s18 }
   0x8   : > { %p3442_p3 = por %p47_p2, %p46_p1  ;;  %s34_s28 = ssub.s32 %s3363_s22, %s4066_s25 }
   0x9   : > { %p53_p5 = scmp.eq.s32.totalorder %s2777_s24, 0  ;;  %p37_p6 = scmp.eq.s32.totalorder %s34_s28, 0 }
   0xa   : > { %p3214_p8 = scmp.lt.s32.totalorder %s3367_s23, 2  ;;  %s198_s6 = sand.u32 1, %s3355_s20  }
   0xb   : > { %p3449_p7 = por %p53_p5, %p52_p4  ;;  %s2834_s7 = sshll.u32 %s3363_s22, 13 }
   0xc   : > { %s3455_s30 = scalar_select %p37_p6, %s3355_s20, %s39_s26  }
   0xd   : > { %s2781_s8 = sshll.u32 %s198_s6, 9  ;;  %s3462_s11 = scalar_lea.hbm %s4051_s0, %s2834_s7 }
   0xe   : > { %s202_s12 = scalar_lea.vmem [#allocation3], %s2781_s8  ;;  %p3466_p9 = pnand %p3214_p8, %p3442_p3 }
   0xf   : > { %s211_s13 = sshll.u32 %s202_s12, 4  ;;  %s3472_s15 = scalar_lea.sflag [#allocation4], %s198_s6  ;;  %s3470_s13 = int_to_ptr.vmem [resolvable:$true] %s211_s13 }
  0x10   : > { %s3287_s16 = scalar_lea.hbm %s3462_s11, 8192  ;;  %p3289_p11 = pneg %p3466_p9 }
  0x11   : > { %p3288_p10 = scmp.ne.s32.totalorder %s3462_s11, %s3287_s16  ;;  %s3292_s24 = scalar_lea.hbm %s4051_s0, 16384 }
  0x12   : > { %p3293_p0 = scmp.lt.u32.totalorder %s3462_s11, %s4051_s0  ;;  %p3294_p1 = scmp.lt.u32.totalorder %s3292_s24, %s3287_s16 }
  0x13   : > { %p3290_p12 = pnand %p3289_p11, %p3288_p10  ;;  %p3296_p3 = scmp.lt.u32.totalorder %s3287_s16, %s3462_s11 }
  0x14   : > { %p3295_p2 = por %p3294_p1, %p3293_p0 }
  0x15   : > { %p3291_p13 = pneg %p3290_p12 }
  0x16   : > { %p3297_p4 = por %p3296_p3, %p3295_p2 }
  0x18   : > { %p3298_p5 = pnand %p3297_p4, %p3291_p13 }
  0x1a   : > { %3301 = shalt.err (!%p3298_p5)
}
  0x1b   : > { %s3302_s28 = scalar_lea.vmem %s3470_s13, 8192  ;;  %s3369_s6 = smov [#allocation3]  }
  0x1c   : > { %p3303_p6 = scmp.ne.s32.totalorder %s3470_s13, %s3302_s28  ;;  %s3307_s7 = sshll.u32 %s3369_s6, 4  ;;  %s3308_s7 = int_to_ptr.vmem [resolvable:$false] %s3307_s7 }
  0x1d   : > { %s3309_s8 = scalar_lea.vmem %s3308_s7, 16384  ;;  %p3310_p12 = scmp.lt.s32.totalorder %s3470_s13, %s3308_s7 }
  0x1e   : > { %p3305_p8 = pnand %p3303_p6, %p3289_p11  ;;  %p3311_p0 = scmp.lt.s32.totalorder %s3309_s8, %s3302_s28 }
  0x20   : > { %p3306_p10 = pneg %p3305_p8  ;;  %p3312_p1 = por %p3311_p0, %p3310_p12 }
  0x22   : > { %p3313_p2 = pnand %p3312_p1, %p3306_p10 }
  0x24   : > { %3316 = shalt.err (!%p3313_p2)
}
  0x25   : > { %s3370_s9 = smov 256   ;;  %s3371_s10 = smov 16  }
  0x26   : > { %3213 = dma.hbm_to_vmem [thread:$0]  (!%p3466_p9), %s3462_s11, 8192, %s3470_s13, %s3472_s15, %s3370_s9, %s3370_s9, %s3371_s10  }
  0x27   : > { %p2784_p11 = scmp.ge.s32.totalorder %s3367_s23, 1  ;;  %p219_p13 = scmp.lt.s32.totalorder %s3367_s23, 3 }
  0x29   : > { %p220_p3 = pnand %p2784_p11, %p219_p13 }
  0x2a   : > { %s225_s12 = sand.u32 (!%p220_p3), 1, %s3351_s19  }
  0x2b   : > { %223 = sbr.rel (%p220_p3) target bundleno = 1602 (0x642), region = 40  ;;  %s2785_s16 = sshll.u32 (!%p220_p3), %s225_s12, 9 }
  0x2c   : > { %s226_s17 = scalar_lea.sflag (!%p220_p3), [#allocation4], %s225_s12  ;;  %s3503_s18 = scalar_lea.vmem (!%p220_p3), [#allocation3], %s2785_s16 }
  0x32   : > { %3342 = dma.done.wait (%p3449_p7), %s226_s17, 8192  }
  0x33   : > { %3344 = vsyncadd (%p3449_p7), %s226_s17, 4294959104  ;;  %v279_v0 = vld [vmem:[%s3503_s18 + $0x20] sm:$0xff]  ;;  %v280_v1 = vld [vmem:[%s3503_s18 + $0x28] sm:$0xff]  ;;  %vm266_vm0 = vcmask 64512   ;;  %vm597_vm1 = vcmask 1041409   ;;  %vm599_vm2 = vcmask 1042434  }
  0x34   : > { %v275_v2 = vld [vmem:[%s3503_s18] sm:$0xff]  ;;  %v345_v3 = vadd.f32 %v280_v1, %v279_v0  ;;  %v276_v4 = vld [vmem:[%s3503_s18 + $0x8] sm:$0xff]  ;;  %v281_v5 = vld [vmem:[%s3503_s18 + $0x30] sm:$0xff]  ;;  %vm601_vm3 = vcmask 1043459   ;;  %vm603_vm4 = vcmask 1044484   ;;  %vm605_vm5 = vcmask 1045509  }
  0x35   : > { %v282_v6 = vld [vmem:[%s3503_s18 + $0x38] sm:$0xff]  ;;  %v339_v7 = vadd.f32 %v276_v4, %v275_v2  ;;  %v277_v8 = vld [vmem:[%s3503_s18 + $0x10] sm:$0xff]  ;;  %v291_v14 = vld [vmem:[%s3503_s18 + $0x80] sm:$0xff]  ;;  %vm607_vm6 = vcmask 1046534   ;;  %vm609_vm7 = vcmask 1047559   ;;  %vm3374_vm8 = vmmov 0  }
  0x36   : > { %v278_v9 = vld [vmem:[%s3503_s18 + $0x18] sm:$0xff]  ;;  %346 = vadd.xlane.f32.xlu1 %v345_v3  ;;  %v348_v10 = vadd.f32 %v282_v6, %v281_v5  ;;  %v293_v12 = vld [vmem:[%s3503_s18 + $0x90] sm:$0xff]  ;;  %v292_v15 = vld [vmem:[%s3503_s18 + $0x88] sm:$0xff]  ;;  %v3372_v6 = vmov 0.0   ;;  %vm735_vm9 = vcmask 261120   ;;  %p257_p7 = scmp.lt.s32.totalorder %s3359_s21, 1 }
  0x37   : > { %340 = vadd.xlane.f32.xlu0 %v339_v7  ;;  %v342_v11 = vadd.f32 %v278_v9, %v277_v8  ;;  %v294_v13 = vld [vmem:[%s3503_s18 + $0x98] sm:$0xff]  ;;  %v363_v17 = vadd.f32 %v292_v15, %v291_v14  ;;  %v295_v18 = vld [vmem:[%s3503_s18 + $0xa0] sm:$0xff]  ;;  %v296_v19 = vld [vmem:[%s3503_s18 + $0xa8] sm:$0xff]  ;;  %267 = vst.msk [vmem:[#allocation2] sm:$0xff] %vm266_vm0, %v3372_v6  ;;  %2940 = vmatprep.mubr.msk.f32.mxu0 %vm3374_vm8, %v3372_v6 }
  0x38   : > { %v366_v16 = vadd.f32 %v294_v13, %v293_v12  ;;  %v283_v20 = vld [vmem:[%s3503_s18 + $0x40] sm:$0xff]  ;;  %v284_v21 = vld [vmem:[%s3503_s18 + $0x48] sm:$0xff]  ;;  %v369_v22 = vadd.f32 %v296_v19, %v295_v18  ;;  %v297_v24 = vld [vmem:[%s3503_s18 + $0xb0] sm:$0xff]  ;;  %268 = vst.msk [vmem:[#allocation2 + $0x8] sm:$0xff] %vm266_vm0, %v3372_v6  ;;  %2951 = vmatprep.mubr.msk.f32.mxu1 %vm3374_vm8, %v3372_v6  ;;  %s4068_s21 = smov (!%p257_p7, %s3359_s21), 1 }
  0x39   : > { %v351_v23 = vadd.f32 %v284_v21, %v283_v20  ;;  %v298_v25 = vld [vmem:[%s3503_s18 + $0xb8] sm:$0xff]  ;;  %v285_v26 = vld [vmem:[%s3503_s18 + $0x50] sm:$0xff]  ;;  %v307_v32 = vld [vmem:[%s3503_s18 + $0x100] sm:$0xff]  ;;  %269 = vst.msk [vmem:[#allocation2 + $0x10] sm:$0xff] %vm266_vm0, %v3372_v6  ;;  %s2835_s9 = sshll.u32 %s4068_s21, 5 }
  0x3a   : > { %349 = vadd.xlane.f32.xlu1 %v348_v10  ;;  %v286_v27 = vld [vmem:[%s3503_s18 + $0x58] sm:$0xff]  ;;  %v372_v28 = vadd.f32 %v298_v25, %v297_v24  ;;  %v309_v30 = vld [vmem:[%s3503_s18 + $0x110] sm:$0xff]  ;;  %v308_v33 = vld [vmem:[%s3503_s18 + $0x108] sm:$0xff]  ;;  %270 = vst.msk [vmem:[#allocation2 + $0x18] sm:$0xff] %vm266_vm0, %v3372_v6  ;;  %s261_s16 = scalar_lea.vmem %s4056_s5, %s2835_s9 }
  0x3b   : > { %343 = vadd.xlane.f32.xlu0 %v342_v11  ;;  %v354_v29 = vadd.f32 %v286_v27, %v285_v26  ;;  %v310_v31 = vld [vmem:[%s3503_s18 + $0x118] sm:$0xff]  ;;  %v387_v35 = vadd.f32 %v308_v33, %v307_v32  ;;  %v299_v36 = vld [vmem:[%s3503_s18 + $0xc0] sm:$0xff]  ;;  %v300_v37 = vld [vmem:[%s3503_s18 + $0xc8] sm:$0xff] }
  0x3c   : > { %v390_v34 = vadd.f32 %v310_v31, %v309_v30  ;;  %v287_v38 = vld [vmem:[%s3503_s18 + $0x60] sm:$0xff]  ;;  %v288_v39 = vld [vmem:[%s3503_s18 + $0x68] sm:$0xff]  ;;  %v375_v40 = vadd.f32 %v300_v37, %v299_v36  ;;  %v289_v42 = vld [vmem:[%s3503_s18 + $0x70] sm:$0xff]  ;;  %v3373_v36 = vmov 0.0|0.0  }
  0x3d   : > { %v357_v41 = vadd.f32 %v288_v39, %v287_v38  ;;  %v290_v43 = vld [vmem:[%s3503_s18 + $0x78] sm:$0xff]  ;;  %v311_v44 = vld [vmem:[%s3503_s18 + $0x120] sm:$0xff]  ;;  %v312_v45 = vld [vmem:[%s3503_s18 + $0x128] sm:$0xff]  ;;  %3136 = vmatprep.subr.bf16.mxu0 %v3373_v36  ;;  %3142 = vmatprep.subr.bf16.mxu1 %v3373_v36 }
  0x3e   : > { %367 = vadd.xlane.f32.xlu1 %v366_v16  ;;  %v360_v46 = vadd.f32 %v290_v43, %v289_v42  ;;  %v393_v47 = vadd.f32 %v312_v45, %v311_v44  ;;  %v313_v48 = vld [vmem:[%s3503_s18 + $0x130] sm:$0xff]  ;;  %v314_v49 = vld [vmem:[%s3503_s18 + $0x138] sm:$0xff]  ;;  %v323_v56 = vld [vmem:[%s3503_s18 + $0x180] sm:$0xff]  ;;  %v467_v44 = vlaneseq }
  0x3f   : > { %364 = vadd.xlane.f32.xlu0 %v363_v17  ;;  %v301_v50 = vld [vmem:[%s3503_s18 + $0xd0] sm:$0xff]  ;;  %v302_v51 = vld [vmem:[%s3503_s18 + $0xd8] sm:$0xff]  ;;  %v396_v52 = vadd.f32 %v314_v49, %v313_v48  ;;  %v324_v57 = vld [vmem:[%s3503_s18 + $0x188] sm:$0xff] }
  0x40   : > { %v378_v53 = vadd.f32 %v302_v51, %v301_v50  ;;  %v325_v54 = vld [vmem:[%s3503_s18 + $0x190] sm:$0xff]  ;;  %v326_v55 = vld [vmem:[%s3503_s18 + $0x198] sm:$0xff]  ;;  %v411_v59 = vadd.f32 %v324_v57, %v323_v56  ;;  %v315_v60 = vld [vmem:[%s3503_s18 + $0x140] sm:$0xff]  ;;  %v470_v48 = vshrl.u32 %v467_v44, 7 }
  0x41   : > { %v414_v58 = vadd.f32 %v326_v55, %v325_v54  ;;  %v316_v61 = vld [vmem:[%s3503_s18 + $0x148] sm:$0xff]  ;;  %v303_v62 = vld [vmem:[%s3503_s18 + $0xe0] sm:$0xff]  ;;  %v305_v2 = vld [vmem:[%s3503_s18 + $0xf0] sm:$0xff] }
  0x42   : > { %370 = vadd.xlane.f32.xlu1 %v369_v22  ;;  %v304_v63 = vld [vmem:[%s3503_s18 + $0xe8] sm:$0xff]  ;;  %v399_v0 = vadd.f32 %v316_v61, %v315_v60  ;;  %v306_v3 = vld [vmem:[%s3503_s18 + $0xf8] sm:$0xff]  ;;  %v327_v4 = vld [vmem:[%s3503_s18 + $0x1a0] sm:$0xff] }
  0x43   : > { %352 = vadd.xlane.f32.xlu0 %v351_v23  ;;  %v381_v1 = vadd.f32 %v304_v63, %v303_v62  ;;  %v328_v5 = vld [vmem:[%s3503_s18 + $0x1a8] sm:$0xff]  ;;  %v384_v7 = vadd.f32 %v306_v3, %v305_v2  ;;  %v329_v9 = vld [vmem:[%s3503_s18 + $0x1b0] sm:$0xff]  ;;  %v330_v10 = vld [vmem:[%s3503_s18 + $0x1b8] sm:$0xff] }
  0x44   : > { %v417_v8 = vadd.f32 %v328_v5, %v327_v4  ;;  %v317_v11 = vld [vmem:[%s3503_s18 + $0x150] sm:$0xff]  ;;  %v318_v12 = vld [vmem:[%s3503_s18 + $0x158] sm:$0xff]  ;;  %v420_v13 = vadd.f32 %v330_v10, %v329_v9  ;;  %v331_v15 = vld [vmem:[%s3503_s18 + $0x1c0] sm:$0xff] }
  0x45   : > { %v402_v14 = vadd.f32 %v318_v12, %v317_v11  ;;  %v332_v16 = vld [vmem:[%s3503_s18 + $0x1c8] sm:$0xff]  ;;  %v319_v17 = vld [vmem:[%s3503_s18 + $0x160] sm:$0xff]  ;;  %v333_v21 = vld [vmem:[%s3503_s18 + $0x1d0] sm:$0xff] }
  0x46   : > { %373 = vadd.xlane.f32.xlu1 %v372_v28  ;;  %v320_v18 = vld [vmem:[%s3503_s18 + $0x168] sm:$0xff]  ;;  %v423_v19 = vadd.f32 %v332_v16, %v331_v15  ;;  %v334_v22 = vld [vmem:[%s3503_s18 + $0x1d8] sm:$0xff]  ;;  %v321_v23 = vld [vmem:[%s3503_s18 + $0x170] sm:$0xff] }
  0x47   : > { %355 = vadd.xlane.f32.xlu0 %v354_v29  ;;  %v405_v20 = vadd.f32 %v320_v18, %v319_v17  ;;  %v322_v24 = vld [vmem:[%s3503_s18 + $0x178] sm:$0xff]  ;;  %v426_v25 = vadd.f32 %v334_v22, %v333_v21  ;;  %v337_v27 = vld [vmem:[%s3503_s18 + $0x1f0] sm:$0xff]  ;;  %v335_v29 = vld [vmem:[%s3503_s18 + $0x1e0] sm:$0xff] }
  0x48   : > { %v408_v26 = vadd.f32 %v322_v24, %v321_v23  ;;  %v338_v28 = vld [vmem:[%s3503_s18 + $0x1f8] sm:$0xff]  ;;  %v336_v30 = vld [vmem:[%s3503_s18 + $0x1e8] sm:$0xff]  ;;  %v687_v33 = vld [vmem:[%s4053_s2] sm:$0xff] }
  0x49   : > { %v432_v31 = vadd.f32 %v338_v28, %v337_v27  ;;  %v429_v32 = vadd.f32 %v336_v30, %v335_v29  ;;  %v692_v38 = vld [vmem:[%s4053_s2 + $0x28] sm:$0xff] }
  0x4a   : > { %391 = vadd.xlane.f32.xlu1 %v390_v34  ;;  %v688_v34 = vld [vmem:[%s4053_s2 + $0x8] sm:$0xff] }
  0x4b   : > { %388 = vadd.xlane.f32.xlu0 %v387_v35  ;;  %v691_v35 = vld [vmem:[%s4053_s2 + $0x20] sm:$0xff]  ;;  %v3137_v37 = vpack.c.bf16 %v688_v34, %v687_v33  ;;  %v272_v34 = vld [vmem:[#allocation2 + $0x8] sm:$0xff] }
  0x4c   : > { %v3143_v39 = vpack.c.bf16 %v692_v38, %v691_v35 }
  0x4d   : > { %3138 = vmatpush3.bf16.msra.mxu0 %v3137_v37 }
  0x4e   : > { %376 = vadd.xlane.f32.xlu1 %v375_v40  ;;  %3144 = vmatpush3.bf16.msra.mxu1 %v3143_v39 }
  0x4f   : > { %358 = vadd.xlane.f32.xlu0 %v357_v41  ;;  %3139 = vmatprep.subr.bf16.mxu0 %v3373_v36 }
  0x50   : > { %3145 = vmatprep.subr.bf16.mxu1 %v3373_v36 }
  0x52   : > { %361 = vadd.xlane.f32.xlu1 %v360_v46 }
  0x53   : > { %394 = vadd.xlane.f32.xlu0 %v393_v47  ;;  %v468_v47 = vand.u32 127, %v467_v44 }
  0x55   : > { %v3597_v51 = vsub.s32 %v468_v47, %v470_v48 }
  0x56   : > { %397 = vadd.xlane.f32.xlu1 %v396_v52 }
  0x57   : > { %379 = vadd.xlane.f32.xlu0 %v378_v53 }
  0x5a   : > { %415 = vadd.xlane.f32.xlu1 %v414_v58 }
  0x5b   : > { %412 = vadd.xlane.f32.xlu0 %v411_v59 }
  0x5e   : > { %400 = vadd.xlane.f32.xlu1 %v399_v0 }
  0x5f   : > { %382 = vadd.xlane.f32.xlu0 %v381_v1 }
  0x62   : > { %385 = vadd.xlane.f32.xlu1 %v384_v7 }
  0x63   : > { %418 = vadd.xlane.f32.xlu0 %v417_v8  ;;  %v271_v8 = vld [vmem:[#allocation2] sm:$0xff] }
  0x66   : > { %421 = vadd.xlane.f32.xlu1 %v420_v13 }
  0x67   : > { %403 = vadd.xlane.f32.xlu0 %v402_v14 }
  0x6a   : > { %424 = vadd.xlane.f32.xlu1 %v423_v19 }
  0x6b   : > { %406 = vadd.xlane.f32.xlu0 %v405_v20 }
  0x6e   : > { %427 = vadd.xlane.f32.xlu1 %v426_v25 }
  0x6f   : > { %409 = vadd.xlane.f32.xlu0 %v408_v26 }
  0x72   : > { %433 = vadd.xlane.f32.xlu1 %v432_v31 }
  0x73   : > { %430 = vadd.xlane.f32.xlu0 %v429_v32 }
  0xc3   : > { %v347_v40 = vpop.xlane.xlu1 %346 }
  0xc4   : > { %v341_v41 = vpop.xlane.xlu0 %340  ;;  %v480_v59 = vrot.slane %v347_v40, %v3597_v51 }
  0xc5   : > { %v472_v55 = vrot.slane %v341_v41, %v3597_v51 }
  0xc7   : > { %v350_v42 = vpop.xlane.xlu1 %349 }
  0xc8   : > { %v344_v43 = vpop.xlane.xlu0 %343  ;;  %v484_v60 = vrot.slane %v350_v42, %v3597_v51 }
  0xc9   : > { %v476_v53 = vrot.slane %v344_v43, %v3597_v51 }
  0xcb   : > { %v368_v45 = vpop.xlane.xlu1 %367  ;;  %v598_v57 = vsel %vm597_vm1, %v476_v53, %v472_v55 }
  0xcc   : > { %v365_v46 = vpop.xlane.xlu0 %364  ;;  %v600_v61 = vsel %vm599_vm2, %v480_v59, %v598_v57  ;;  %v508_v17 = vrot.slane %v368_v45, %v3597_v51 }
  0xcd   : > { %v602_v3 = vsel %vm601_vm3, %v484_v60, %v600_v61  ;;  %v504_v18 = vrot.slane %v365_v46, %v3597_v51 }
  0xcf   : > { %v371_v49 = vpop.xlane.xlu1 %370  ;;  %v611_v24 = vsel %vm597_vm1, %v508_v17, %v504_v18  ;;  %v689_v17 = vld [vmem:[%s4053_s2 + $0x10] sm:$0xff]  ;;  %v690_v18 = vld [vmem:[%s4053_s2 + $0x18] sm:$0xff] }
  0xd0   : > { %v353_v50 = vpop.xlane.xlu0 %352  ;;  %v512_v20 = vrot.slane %v371_v49, %v3597_v51 }
  0xd1   : > { %v488_v62 = vrot.slane %v353_v50, %v3597_v51 }
  0xd2   : > { %v612_v28 = vsel %vm599_vm2, %v512_v20, %v611_v24 }
  0xd3   : > { %v374_v52 = vpop.xlane.xlu1 %373  ;;  %v604_v4 = vsel %vm603_vm4, %v488_v62, %v602_v3 }
  0xd4   : > { %v356_v54 = vpop.xlane.xlu0 %355  ;;  %v516_v21 = vrot.slane %v374_v52, %v3597_v51 }
  0xd5   : > { %v492_v0 = vrot.slane %v356_v54, %v3597_v51 }
  0xd6   : > { %v613_v30 = vsel %vm601_vm3, %v516_v21, %v612_v28  ;;  %v274_v21 = vld [vmem:[#allocation2 + $0x18] sm:$0xff] }
  0xd7   : > { %v3601_v56 = vpop.xlane.xlu1 %391  ;;  %v606_v7 = vsel %vm605_vm5, %v492_v0, %v604_v4 }
  0xd8   : > { %v3604_v58 = vpop.xlane.xlu0 %388  ;;  %v540_v43 = vrot.slane %v3601_v56, %v3597_v51 }
  0xd9   : > { %v536_v44 = vrot.slane %v3604_v58, %v3597_v51 }
  0xdb   : > { %v377_v63 = vpop.xlane.xlu1 %376  ;;  %v618_v50 = vsel %vm597_vm1, %v540_v43, %v536_v44  ;;  %v702_v43 = vld [vmem:[%s4053_s2 + $0x78] sm:$0xff] }
  0xdc   : > { %v359_v1 = vpop.xlane.xlu0 %358  ;;  %v520_v22 = vrot.slane %v377_v63, %v3597_v51 }
  0xdd   : > { %v496_v2 = vrot.slane %v359_v1, %v3597_v51 }
  0xde   : > { %v614_v31 = vsel %vm603_vm4, %v520_v22, %v613_v30  ;;  %v3140_v22 = vpack.c.bf16 %v690_v18, %v689_v17  ;;  %v696_v30 = vld [vmem:[%s4053_s2 + $0x48] sm:$0xff]  ;;  %v726_v17 = vld [vmem:[%s4053_s2 + $0x138] sm:$0xff] }
  0xdf   : > { %v362_v5 = vpop.xlane.xlu1 %361  ;;  %v608_v11 = vsel %vm607_vm6, %v496_v2, %v606_v7  ;;  %v273_v2 = vld [vmem:[#allocation2 + $0x10] sm:$0xff] }
  0xe0   : > { %v500_v9 = vrot.slane %v362_v5, %v3597_v51  ;;  %v395_v10 = vpop.xlane.xlu0 %394  ;;  %3141 = vmatpush3.bf16.msra.mxu0 %v3140_v22  ;;  %v731_v22 = vld [vmem:[%s4053_s2 + $0x160] sm:$0xff] }
  0xe1   : > { %v544_v45 = vrot.slane %v395_v10, %v3597_v51  ;;  %3148 = vmatprep.subr.bf16.mxu0 %v3373_v36 }
  0xe2   : > { %v610_v12 = vsel %vm609_vm7, %v500_v9, %v608_v11 }
  0xe3   : > { %v636_v13 = vadd.f32 %v610_v12, %v271_v8  ;;  %v398_v14 = vpop.xlane.xlu1 %397  ;;  %v619_v53 = vsel %vm599_vm2, %v544_v45, %v618_v50 }
  0xe4   : > { %v380_v15 = vpop.xlane.xlu0 %379  ;;  %v548_v46 = vrot.slane %v398_v14, %v3597_v51 }
  0xe5   : > { %641 = vst.msk [vmem:[#allocation2] sm:$0xff] %vm266_vm0, %v636_v13  ;;  %v524_v25 = vrot.slane %v380_v15, %v3597_v51 }
  0xe6   : > { %v620_v57 = vsel %vm601_vm3, %v548_v46, %v619_v53  ;;  %v703_v46 = vld [vmem:[%s4053_s2 + $0x80] sm:$0xff]  ;;  %v705_v53 = vld [vmem:[%s4053_s2 + $0x90] sm:$0xff] }
  0xe7   : > { %v416_v16 = vpop.xlane.xlu1 %415  ;;  %v615_v33 = vsel %vm605_vm5, %v524_v25, %v614_v31  ;;  %v699_v31 = vld [vmem:[%s4053_s2 + $0x60] sm:$0xff] }
  0xe8   : > { %v413_v19 = vpop.xlane.xlu0 %412  ;;  %v572_v54 = vrot.slane %v416_v16, %v3597_v51 }
  0xe9   : > { %v568_v55 = vrot.slane %v413_v19, %v3597_v51  ;;  %v693_v19 = vld [vmem:[%s4053_s2 + $0x30] sm:$0xff] }
  0xeb   : > { %v401_v23 = vpop.xlane.xlu1 %400  ;;  %v625_v4 = vsel %vm597_vm1, %v572_v54, %v568_v55  ;;  %v706_v54 = vld [vmem:[%s4053_s2 + $0x98] sm:$0xff]  ;;  %v709_v55 = vld [vmem:[%s4053_s2 + $0xb0] sm:$0xff] }
  0xec   : > { %v383_v26 = vpop.xlane.xlu0 %382  ;;  %v648_v27 = vld [vmem:[#allocation2] sm:$0xff]  ;;  %v552_v48 = vrot.slane %v401_v23, %v3597_v51 }
  0xed   : > { %v528_v29 = vrot.slane %v383_v26, %v3597_v51  ;;  %652 = vxpose.xlu0.b32.start [1/4] (short) (narrow) %v648_v27, 8 }
  0xee   : > { %v621_v60 = vsel %vm603_vm4, %v552_v48, %v620_v57  ;;  %v707_v48 = vld [vmem:[%s4053_s2 + $0xa0] sm:$0xff]  ;;  %v3164_v57 = vpack.c.bf16 %v706_v54, %v705_v53 }
  0xef   : > { %v386_v32 = vpop.xlane.xlu1 %385  ;;  %v616_v38 = vsel %vm607_vm6, %v528_v29, %v615_v33  ;;  %v695_v29 = vld [vmem:[%s4053_s2 + $0x40] sm:$0xff] }
  0xf0   : > { %v532_v35 = vrot.slane %v386_v32, %v3597_v51  ;;  %v419_v37 = vpop.xlane.xlu0 %418  ;;  %v700_v32 = vld [vmem:[%s4053_s2 + $0x68] sm:$0xff]  ;;  %v685_v33 = vld [vmem:[%s4052_s1] sm:$0xff] }
  0xf1   : > { %v576_v58 = vrot.slane %v419_v37, %v3597_v51  ;;  %v3149_v37 = vpack.c.bf16 %v696_v30, %v695_v29 }
  0xf2   : > { %v617_v39 = vsel %vm609_vm7, %v532_v35, %v616_v38  ;;  %v3155_v38 = vpack.c.bf16 %v700_v32, %v699_v31 }
  0xf3   : > { %v637_v40 = vadd.f32 %v617_v39, %v272_v34  ;;  %v422_v41 = vpop.xlane.xlu1 %421  ;;  %v626_v8 = vsel %vm599_vm2, %v576_v58, %v625_v4  ;;  %v697_v39 = vld [vmem:[%s4053_s2 + $0x50] sm:$0xff]  ;;  %v718_v4 = vld [vmem:[%s4053_s2 + $0xf8] sm:$0xff] }
  0xf4   : > { %v404_v42 = vpop.xlane.xlu0 %403  ;;  %v580_v61 = vrot.slane %v422_v41, %v3597_v51  ;;  %v698_v41 = vld [vmem:[%s4053_s2 + $0x58] sm:$0xff] }
  0xf5   : > { %642 = vst.msk [vmem:[#allocation2 + $0x8] sm:$0xff] %vm266_vm0, %v637_v40  ;;  %v556_v52 = vrot.slane %v404_v42, %v3597_v51  ;;  %v701_v42 = vld [vmem:[%s4053_s2 + $0x70] sm:$0xff]  ;;  %v3152_v44 = vpack.c.bf16 %v698_v41, %v697_v39 }
  0xf6   : > { %v627_v11 = vsel %vm601_vm3, %v580_v61, %v626_v8  ;;  %v3158_v45 = vpack.c.bf16 %v702_v43, %v701_v42  ;;  %v715_v61 = vld [vmem:[%s4053_s2 + $0xe0] sm:$0xff] }
  0xf7   : > { %v425_v47 = vpop.xlane.xlu1 %424  ;;  %v622_v0 = vsel %vm605_vm5, %v556_v52, %v621_v60  ;;  %v712_v60 = vld [vmem:[%s4053_s2 + $0xc8] sm:$0xff]  ;;  %v719_v8 = vld [vmem:[%s4053_s2 + $0x100] sm:$0xff] }
  0xf8   : > { %v407_v49 = vpop.xlane.xlu0 %406  ;;  %v584_v1 = vrot.slane %v425_v47, %v3597_v51  ;;  %v704_v47 = vld [vmem:[%s4053_s2 + $0x88] sm:$0xff] }
  0xf9   : > { %v560_v56 = vrot.slane %v407_v49, %v3597_v51  ;;  %v708_v49 = vld [vmem:[%s4053_s2 + $0xa8] sm:$0xff]  ;;  %v3161_v50 = vpack.c.bf16 %v704_v47, %v703_v46 }
  0xfa   : > { %v628_v15 = vsel %vm603_vm4, %v584_v1, %v627_v11  ;;  %v3167_v52 = vpack.c.bf16 %v708_v49, %v707_v48  ;;  %v713_v1 = vld [vmem:[%s4053_s2 + $0xd0] sm:$0xff]  ;;  %v724_v11 = vld [vmem:[%s4053_s2 + $0x128] sm:$0xff] }
  0xfb   : > { %v428_v59 = vpop.xlane.xlu1 %427  ;;  %v623_v5 = vsel %vm607_vm6, %v560_v56, %v622_v0  ;;  %v710_v56 = vld [vmem:[%s4053_s2 + $0xb8] sm:$0xff] }
  0xfc   : > { %v410_v62 = vpop.xlane.xlu0 %409  ;;  %v649_v63 = vld [vmem:[#allocation2 + $0x8] sm:$0xff]  ;;  %v588_v7 = vrot.slane %v428_v59, %v3597_v51  ;;  %v3170_v58 = vpack.c.bf16 %v710_v56, %v709_v55  ;;  %v711_v59 = vld [vmem:[%s4053_s2 + $0xc0] sm:$0xff] }
  0xfd   : > { %v564_v3 = vrot.slane %v410_v62, %v3597_v51  ;;  %653 = vxpose.xlu0.b32.cont [2/4] (short) (narrow) %v649_v63, 8  ;;  %v716_v62 = vld [vmem:[%s4053_s2 + $0xe8] sm:$0xff]  ;;  %v3173_v63 = vpack.c.bf16 %v712_v60, %v711_v59 }
  0xfe   : > { %v629_v20 = vsel %vm605_vm5, %v588_v7, %v628_v15  ;;  %v3179_v0 = vpack.c.bf16 %v716_v62, %v715_v61  ;;  %v722_v15 = vld [vmem:[%s4053_s2 + $0x118] sm:$0xff] }
  0xff   : > { %v624_v9 = vsel %vm609_vm7, %v564_v3, %v623_v5  ;;  %v434_v10 = vpop.xlane.xlu1 %433  ;;  %v717_v3 = vld [vmem:[%s4053_s2 + $0xf0] sm:$0xff] }
 0x100   : > { %v638_v12 = vadd.f32 %v624_v9, %v273_v2  ;;  %v431_v13 = vpop.xlane.xlu0 %430  ;;  %v596_v14 = vrot.slane %v434_v10, %v3597_v51  ;;  %v714_v2 = vld [vmem:[%s4053_s2 + $0xd8] sm:$0xff]  ;;  %v3182_v7 = vpack.c.bf16 %v718_v4, %v717_v3  ;;  %v720_v9 = vld [vmem:[%s4053_s2 + $0x108] sm:$0xff]  ;;  %v723_v10 = vld [vmem:[%s4053_s2 + $0x120] sm:$0xff] }
 0x101   : > { %v592_v16 = vrot.slane %v431_v13, %v3597_v51  ;;  %v694_v51 = vld [vmem:[%s4053_s2 + $0x38] sm:$0xff]  ;;  %v3176_v5 = vpack.c.bf16 %v714_v2, %v713_v1  ;;  %v3191_v13 = vpack.c.bf16 %v724_v11, %v723_v10 }
 0x102   : > { %643 = vst.msk [vmem:[#allocation2 + $0x10] sm:$0xff] %vm266_vm0, %v638_v12  ;;  %v3146_v24 = vpack.c.bf16 %v694_v51, %v693_v19  ;;  %v3185_v12 = vpack.c.bf16 %v720_v9, %v719_v8  ;;  %v732_v51 = vld [vmem:[%s4053_s2 + $0x168] sm:$0xff] }
 0x103   : > { %v630_v23 = vsel %vm607_vm6, %v592_v16, %v629_v20  ;;  %v725_v16 = vld [vmem:[%s4053_s2 + $0x130] sm:$0xff]  ;;  %v727_v20 = vld [vmem:[%s4053_s2 + $0x140] sm:$0xff] }
 0x104   : > { %v631_v25 = vsel %vm609_vm7, %v596_v14, %v630_v23  ;;  %3147 = vmatpush3.bf16.msra.mxu1 %v3146_v24  ;;  %v721_v14 = vld [vmem:[%s4053_s2 + $0x110] sm:$0xff]  ;;  %v3194_v19 = vpack.c.bf16 %v726_v17, %v725_v16  ;;  %v3203_v24 = vpack.c.bf16 %v732_v51, %v731_v22 }
 0x105   : > { %v639_v26 = vadd.f32 %v631_v25, %v274_v21  ;;  %3154 = vmatprep.subr.bf16.mxu1 %v3373_v36  ;;  %v3188_v18 = vpack.c.bf16 %v722_v15, %v721_v14  ;;  %v728_v21 = vld [vmem:[%s4053_s2 + $0x148] sm:$0xff]  ;;  %v729_v25 = vld [vmem:[%s4053_s2 + $0x150] sm:$0xff] }
 0x106   : > { %v3197_v23 = vpack.c.bf16 %v728_v21, %v727_v20 }
 0x107   : > { %644 = vst.msk [vmem:[#allocation2 + $0x18] sm:$0xff] %vm266_vm0, %v639_v26  ;;  %v730_v26 = vld [vmem:[%s4053_s2 + $0x158] sm:$0xff] }
 0x108   : > { %v3200_v29 = vpack.c.bf16 %v730_v26, %v729_v25 }
 0x109   : > { %v650_v27 = vld [vmem:[#allocation2 + $0x10] sm:$0xff] }
 0x10a   : > { %654 = vxpose.xlu0.b32.cont [3/4] (short) (narrow) %v650_v27, 8  ;;  %v733_v27 = vld [vmem:[%s4053_s2 + $0x170] sm:$0xff] }
 0x10e   : > { %v651_v28 = vld [vmem:[#allocation2 + $0x18] sm:$0xff] }
 0x10f   : > { %655 = vxpose.xlu0.b32.end [4/4] (short) (narrow) %v651_v28, 8  ;;  %v734_v28 = vld [vmem:[%s4053_s2 + $0x178] sm:$0xff] }
 0x110   : > { %v3206_v30 = vpack.c.bf16 %v734_v28, %v733_v27 }
 0x183   : > { %v668_v34 = vpop.trf.xlu0 }
 0x184   : > { %v684_v35 = vmul.f32 0.00390625, %v668_v34 }
 0x186   : > { %v3705_v40 = vadd.f32 %v685_v33, %v684_v35 }
 0x188   : > { %2941 = vmatmul.mubr.msk.f32.vlgmr.msra.gmra.mrb[0].mxu0 %vm735_vm9, %v3705_v40  ;;  %2952 = vmatmul.mubr.msk.f32.vlgmr.msra.gmra.mrb[0].mxu1 %vm735_vm9, %v3705_v40 }
 0x189   : > { %3150 = vmatpush3.bf16.msra.mxu0 %v3149_v37  ;;  %3156 = vmatpush3.bf16.msra.mxu1 %v3155_v38 }
 0x18a   : > { %3151 = vmatprep.subr.bf16.mxu0 %v3373_v36  ;;  %3157 = vmatprep.subr.bf16.mxu1 %v3373_v36 }
 0x18b   : > { %2962 = vmatprep.mubr.msk.f32.mxu0 %vm3374_vm8, %v3372_v6  ;;  %2973 = vmatprep.mubr.msk.f32.mxu1 %vm3374_vm8, %v3372_v6 }
 0x18d   : > { %3153 = vmatpush3.bf16.msra.mxu0 %v3152_v44  ;;  %3159 = vmatpush3.bf16.msra.mxu1 %v3158_v45 }
 0x18e   : > { %3160 = vmatprep.subr.bf16.mxu0 %v3373_v36  ;;  %3166 = vmatprep.subr.bf16.mxu1 %v3373_v36 }
 0x190   : > { %2963 = vmatmul.mubr.msk.f32.vlgmr.msra.gmra.mrb[2].mxu0 %vm735_vm9, %v3705_v40  ;;  %2974 = vmatmul.mubr.msk.f32.vlgmr.msra.gmra.mrb[2].mxu1 %vm735_vm9, %v3705_v40 }
 0x191   : > { %3162 = vmatpush3.bf16.msra.mxu0 %v3161_v50  ;;  %3168 = vmatpush3.bf16.msra.mxu1 %v3167_v52 }
 0x192   : > { %3163 = vmatprep.subr.bf16.mxu0 %v3373_v36  ;;  %3169 = vmatprep.subr.bf16.mxu1 %v3373_v36 }
 0x193   : > { %2984 = vmatprep.mubr.msk.f32.mxu0 %vm3374_vm8, %v3372_v6  ;;  %2995 = vmatprep.mubr.msk.f32.mxu1 %vm3374_vm8, %v3372_v6 }
 0x195   : > { %3165 = vmatpush3.bf16.msra.mxu0 %v3164_v57  ;;  %3171 = vmatpush3.bf16.msra.mxu1 %v3170_v58 }
 0x196   : > { %3172 = vmatprep.subr.bf16.mxu0 %v3373_v36  ;;  %3178 = vmatprep.subr.bf16.mxu1 %v3373_v36 }
 0x198   : > { %2985 = vmatmul.mubr.msk.f32.vlgmr.msra.gmra.mrb[4].mxu0 %vm735_vm9, %v3705_v40  ;;  %2996 = vmatmul.mubr.msk.f32.vlgmr.msra.gmra.mrb[4].mxu1 %vm735_vm9, %v3705_v40 }
 0x199   : > { %3174 = vmatpush3.bf16.msra.mxu0 %v3173_v63  ;;  %3180 = vmatpush3.bf16.msra.mxu1 %v3179_v0 }
 0x19a   : > { %3175 = vmatprep.subr.bf16.mxu0 %v3373_v36  ;;  %3181 = vmatprep.subr.bf16.mxu1 %v3373_v36 }
 0x19b   : > { %3006 = vmatprep.mubr.msk.f32.mxu0 %vm3374_vm8, %v3372_v6  ;;  %3017 = vmatprep.mubr.msk.f32.mxu1 %vm3374_vm8, %v3372_v6 }
 0x19d   : > { %3177 = vmatpush3.bf16.msra.mxu0 %v3176_v5  ;;  %3183 = vmatpush3.bf16.msra.mxu1 %v3182_v7 }
 0x19e   : > { %3184 = vmatprep.subr.bf16.mxu0 %v3373_v36  ;;  %3190 = vmatprep.subr.bf16.mxu1 %v3373_v36 }
 0x1a0   : > { %3007 = vmatmul.mubr.msk.f32.vlgmr.msra.gmra.mrb[6].mxu0 %vm735_vm9, %v3705_v40  ;;  %3018 = vmatmul.mubr.msk.f32.vlgmr.msra.gmra.mrb[6].mxu1 %vm735_vm9, %v3705_v40 }
 0x1a1   : > { %3186 = vmatpush3.bf16.msra.mxu0 %v3185_v12  ;;  %3192 = vmatpush3.bf16.msra.mxu1 %v3191_v13 }
 0x1a2   : > { %3187 = vmatprep.subr.bf16.mxu0 %v3373_v36  ;;  %3193 = vmatprep.subr.bf16.mxu1 %v3373_v36 }
 0x1a3   : > { %3028 = vmatprep.mubr.msk.f32.mxu0 %vm3374_vm8, %v3372_v6  ;;  %3039 = vmatprep.mubr.msk.f32.mxu1 %vm3374_vm8, %v3372_v6 }
 0x1a5   : > { %3189 = vmatpush3.bf16.msra.mxu0 %v3188_v18  ;;  %3195 = vmatpush3.bf16.msra.mxu1 %v3194_v19 }
 0x1a6   : > { %3196 = vmatprep.subr.bf16.mxu0 %v3373_v36  ;;  %3202 = vmatprep.subr.bf16.mxu1 %v3373_v36 }
 0x1a8   : > { %3029 = vmatmul.mubr.msk.f32.vlgmr.msra.gmra.mrb[8].mxu0 %vm735_vm9, %v3705_v40  ;;  %3040 = vmatmul.mubr.msk.f32.vlgmr.msra.gmra.mrb[8].mxu1 %vm735_vm9, %v3705_v40 }
 0x1a9   : > { %3198 = vmatpush3.bf16.msra.mxu0 %v3197_v23  ;;  %3204 = vmatpush3.bf16.msra.mxu1 %v3203_v24 }
 0x1aa   : > { %3199 = vmatprep.subr.bf16.mxu0 %v3373_v36  ;;  %3205 = vmatprep.subr.bf16.mxu1 %v3373_v36 }
 0x1ab   : > { %3050 = vmatprep.mubr.msk.f32.mxu0 %vm3374_vm8, %v3372_v6  ;;  %3061 = vmatprep.mubr.msk.f32.mxu1 %vm3374_vm8, %v3372_v6 }
 0x1ad   : > { %3201 = vmatpush3.bf16.msra.mxu0 %v3200_v29  ;;  %3207 = vmatpush3.bf16.msra.mxu1 %v3206_v30 }
 0x1ae   : > { %3064 = vmatprep.subr.mxu0 %v3372_v6  ;;  %3069 = vmatprep.subr.mxu1 %v3372_v6 }
 0x1b0   : > { %3051 = vmatmul.mubr.msk.f32.vlgmr.msra.gmra.mrb[10].mxu0 %vm735_vm9, %v3705_v40  ;;  %3062 = vmatmul.mubr.msk.f32.vlgmr.msra.gmra.mrb[10].mxu1 %vm735_vm9, %v3705_v40 }
 0x1b1   : > { %3066 = vmatprep.mubr.msk.f32.mxu0 %vm3374_vm8, %v3372_v6  ;;  %3071 = vmatprep.mubr.msk.f32.mxu1 %vm3374_vm8, %v3372_v6 }
 0x25b   : > { %v805_v36 = vpop.f32.mrb[0].mxu0  ;;  %v875_v31 = vpop.f32.mrb[0].mxu1 }
 0x25c   : > { %v2942_v32 = vpop.f32.mrb[1].mxu0  ;;  %v2953_v33 = vpop.f32.mrb[1].mxu1 }
 0x263   : > { %v945_v34 = vpop.f32.mrb[2].mxu0  ;;  %v1015_v35 = vpop.f32.mrb[2].mxu1 }
 0x264   : > { %v2964_v37 = vpop.f32.mrb[3].mxu0  ;;  %v2975_v38 = vpop.f32.mrb[3].mxu1 }
 0x26b   : > { %v1085_v39 = vpop.f32.mrb[4].mxu0  ;;  %v1155_v41 = vpop.f32.mrb[4].mxu1 }
 0x26c   : > { %v2986_v42 = vpop.f32.mrb[5].mxu0  ;;  %v2997_v43 = vpop.f32.mrb[5].mxu1  ;;  %3065 = vmatpush3.xpose.msk.msra.mxu0 %vm266_vm0, %v1085_v39  ;;  %3070 = vmatpush3.xpose.msk.msra.mxu1 %vm266_vm0, %v1155_v41  ;;  %v2223_v41 = vld [vmem:[%s4054_s3] sm:$0xff] }
 0x26d   : > { %3074 = vmatprep.subr.mxu0 %v3372_v6  ;;  %3079 = vmatprep.subr.mxu1 %v3372_v6  ;;  %v2227_v42 = vld [vmem:[%s4054_s3 + $0x20] sm:$0xff]  ;;  %v3375_v43 = vmov 0  }
 0x26e   : > { %3269 = vset.pattern.permute.xlu1 %v3375_v43  ;;  %3270 = vset.pattern.permute.xlu0 %v3375_v43 }
 0x26f   : > { %3067 = vmatmul.mubr.msk.f32.vlgmr.msra.gmra.mrb[12].mxu0 %vm266_vm0, %v805_v36  ;;  %3072 = vmatmul.mubr.msk.f32.vlgmr.msra.gmra.mrb[12].mxu1 %vm266_vm0, %v875_v31 }
 0x270   : > { %3076 = vmatprep.mubr.msk.f32.mxu0 %vm3374_vm8, %v3372_v6  ;;  %3081 = vmatprep.mubr.msk.f32.mxu1 %vm3374_vm8, %v3372_v6 }
 0x273   : > { %v1225_v40 = vpop.f32.mrb[6].mxu0  ;;  %v1295_v44 = vpop.f32.mrb[6].mxu1 }
 0x274   : > { %v3008_v45 = vpop.f32.mrb[7].mxu0  ;;  %v3019_v46 = vpop.f32.mrb[7].mxu1  ;;  %3075 = vmatpush3.xpose.msk.msra.mxu0 %vm266_vm0, %v1225_v40  ;;  %3080 = vmatpush3.xpose.msk.msra.mxu1 %vm266_vm0, %v1295_v44  ;;  %v2670_v40 = vld [vmem:[%s4055_s4 + $0x18] sm:$0xff]  ;;  %v2668_v44 = vld [vmem:[%s4055_s4 + $0x8] sm:$0xff] }
 0x275   : > { %3084 = vmatprep.subr.mxu0 %v3372_v6  ;;  %3089 = vmatprep.subr.mxu1 %v3372_v6  ;;  %v2669_v45 = vld [vmem:[%s4055_s4 + $0x10] sm:$0xff] }
 0x276   : > { %2688 = vperm.xlu0 %3270, %v2670_v40  }
 0x277   : > { %3077 = vmatmul.mubr.msk.f32.vlgmr.msra.gmra.mrb[14].mxu0 %vm266_vm0, %v945_v34  ;;  %3082 = vmatmul.mubr.msk.f32.vlgmr.msra.gmra.mrb[14].mxu1 %vm266_vm0, %v1015_v35 }
 0x278   : > { %3086 = vmatprep.mubr.msk.f32.mxu0 %vm3374_vm8, %v3372_v6  ;;  %3091 = vmatprep.mubr.msk.f32.mxu1 %vm3374_vm8, %v3372_v6 }
 0x27b   : > { %v1365_v47 = vpop.f32.mrb[8].mxu0  ;;  %v1435_v48 = vpop.f32.mrb[8].mxu1 }
 0x27c   : > { %v3030_v49 = vpop.f32.mrb[9].mxu0  ;;  %v3041_v50 = vpop.f32.mrb[9].mxu1  ;;  %3085 = vmatpush3.msra.mxu0 %v1365_v47  ;;  %3090 = vmatpush3.msra.mxu1 %v1435_v48  ;;  %v2224_v48 = vld [vmem:[%s4054_s3 + $0x8] sm:$0xff] }
 0x27d   : > { %3094 = vmatprep.subr.mxu0 %v3372_v6  ;;  %3099 = vmatprep.subr.mxu1 %v3372_v6  ;;  %v2225_v49 = vld [vmem:[%s4054_s3 + $0x10] sm:$0xff] }
 0x283   : > { %v3902_v52 = vpop.f32.mrb[10].mxu0  ;;  %v3904_v53 = vpop.f32.mrb[10].mxu1 }
 0x284   : > { %v3052_v54 = vpop.f32.mrb[11].mxu0  ;;  %v3063_v55 = vpop.f32.mrb[11].mxu1 }
 0x285   : > { %v2228_v54 = vld [vmem:[%s4054_s3 + $0x28] sm:$0xff]  ;;  %v2229_v55 = vld [vmem:[%s4054_s3 + $0x30] sm:$0xff] }
 0x342   : > { %v1651_v56 = vpop.f32.mrb[12].mxu0  ;;  %v1727_v57 = vpop.f32.mrb[12].mxu1 }
 0x343   : > { %v1883_v58 = vmul.f32 0.35355338, %v1651_v56  ;;  %v3068_v59 = vpop.f32.mrb[13].mxu0  ;;  %v3073_v60 = vpop.f32.mrb[13].mxu1  ;;  %v1884_v61 = vmul.f32 0.35355338, %v1727_v57 }
 0x344   : > { %v2231_v57 = vld [vmem:[%s4054_s3 + $0x40] sm:$0xff]  ;;  %v2230_v59 = vld [vmem:[%s4054_s3 + $0x38] sm:$0xff]  ;;  %v2232_v60 = vld [vmem:[%s4054_s3 + $0x48] sm:$0xff] }
 0x345   : > { %v1887_v62 = vsel %vm266_vm0, %v1883_v58, -inf  ;;  %v1890_v63 = vsel %vm266_vm0, %v1884_v61, -inf }
 0x346   : > { %1888 = vmax.xlane.f32.xlu1 %v1887_v62  ;;  %v2233_v62 = vld [vmem:[%s4054_s3 + $0x50] sm:$0xff] }
 0x34a   : > { %v1879_v0 = vpop.f32.mrb[14].mxu1  ;;  %1891 = vmax.xlane.f32.xlu1 %v1890_v63  ;;  %v1803_v1 = vpop.f32.mrb[14].mxu0  ;;  %v2235_v63 = vld [vmem:[%s4054_s3 + $0x60] sm:$0xff] }
 0x34b   : > { %v1885_v2 = vmul.f32 0.35355338, %v1803_v1  ;;  %v3078_v3 = vpop.f32.mrb[15].mxu0  ;;  %v3083_v4 = vpop.f32.mrb[15].mxu1  ;;  %v1886_v5 = vmul.f32 0.35355338, %v1879_v0 }
 0x34c   : > { %v2236_v1 = vld [vmem:[%s4054_s3 + $0x68] sm:$0xff]  ;;  %v2237_v3 = vld [vmem:[%s4054_s3 + $0x70] sm:$0xff]  ;;  %v2238_v4 = vld [vmem:[%s4054_s3 + $0x78] sm:$0xff] }
 0x34d   : > { %v1893_v7 = vsel %vm266_vm0, %v1885_v2, -inf  ;;  %v1896_v8 = vsel %vm266_vm0, %v1886_v5, -inf }
 0x34e   : > { %1894 = vmax.xlane.f32.xlu1 %v1893_v7 }
 0x352   : > { %1897 = vmax.xlane.f32.xlu1 %v1896_v8 }
 0x3d3   : > { %v1889_v9 = vpop.xlane.xlu1 %1888 }
 0x3d4   : > { %v1899_v10 = vsub.f32 %v1883_v58, %v1889_v9 }
 0x3d6   : > { %v1903_v11 = vmul.f32 1.442695, %v1899_v10 }
 0x3d7   : > { %v1892_v12 = vpop.xlane.xlu1 %1891 }
 0x3d8   : > { %3271 = vpow2.f32 %v1903_v11  ;;  %v1900_v13 = vsub.f32 %v1884_v61, %v1892_v12 }
 0x3da   : > { %v1905_v14 = vmul.f32 1.442695, %v1900_v13 }
 0x3db   : > { %v1895_v15 = vpop.xlane.xlu1 %1894 }
 0x3dc   : > { %3273 = vpow2.f32 %v1905_v14  ;;  %v1901_v16 = vsub.f32 %v1885_v2, %v1895_v15  ;;  %v2234_v2 = vld [vmem:[%s4054_s3 + $0x58] sm:$0xff] }
 0x3de   : > { %v1907_v17 = vmul.f32 1.442695, %v1901_v16 }
 0x3df   : > { %v1898_v18 = vpop.xlane.xlu1 %1897 }
 0x3e0   : > { %3275 = vpow2.f32 %v1907_v17  ;;  %v1902_v19 = vsub.f32 %v1886_v5, %v1898_v18 }
 0x3e2   : > { %v3272_v20 = vpop.eup %3271  ;;  %v1909_v21 = vmul.f32 1.442695, %v1902_v19 }
 0x3e3   : > { %v1911_v22 = vsel %vm266_vm0, %v3272_v20, 0.0 }
 0x3e4   : > { %3277 = vpow2.f32 %v1909_v21  ;;  %1912 = vadd.xlane.f32.xlu1 %v1911_v22 }
 0x3e6   : > { %v3274_v51 = vpop.eup %3273 }
 0x3e7   : > { %v1914_v23 = vsel %vm266_vm0, %v3274_v51, 0.0 }
 0x3e8   : > { %1915 = vadd.xlane.f32.xlu1 %v1914_v23 }
 0x3ea   : > { %v3276_v24 = vpop.eup %3275 }
 0x3eb   : > { %v1917_v25 = vsel %vm266_vm0, %v3276_v24, 0.0 }
 0x3ec   : > { %1918 = vadd.xlane.f32.xlu1 %v1917_v25 }
 0x3ee   : > { %v3278_v26 = vpop.eup %3277 }
 0x3ef   : > { %v1920_v27 = vsel %vm266_vm0, %v3278_v26, 0.0 }
 0x3f0   : > { %1921 = vadd.xlane.f32.xlu1 %v1920_v27 }
 0x471   : > { %v1913_v28 = vpop.xlane.xlu1 %1912 }
 0x472   : > { %3279 = vrcp.f32 %v1913_v28 }
 0x475   : > { %v1916_v29 = vpop.xlane.xlu1 %1915 }
 0x476   : > { %3281 = vrcp.f32 %v1916_v29 }
 0x479   : > { %v1919_v30 = vpop.xlane.xlu1 %1918 }
 0x47a   : > { %3283 = vrcp.f32 %v1919_v30 }
 0x47c   : > { %v3280_v36 = vpop.eup %3279 }
 0x47d   : > { %v1927_v31 = vmul.f32 %v3280_v36, %v3272_v20  ;;  %v1922_v32 = vpop.xlane.xlu1 %1921 }
 0x47e   : > { %3285 = vrcp.f32 %v1922_v32 }
 0x47f   : > { %3087 = vmatmul.mubr.msk.f32.vlgmr.msra.gmra.mrb[16].mxu0 %vm266_vm0, %v1927_v31 }
 0x480   : > { %v3282_v33 = vpop.eup %3281  ;;  %3095 = vmatpush3.msra.mxu0 %v3902_v52  ;;  %3096 = vmatprep.mubr.msk.f32.mxu0 %vm3374_vm8, %v3372_v6 }
 0x481   : > { %v1928_v34 = vmul.f32 %v3282_v33, %v3274_v51 }
 0x483   : > { %3092 = vmatmul.mubr.msk.f32.vlgmr.msra.gmra.mrb[16].mxu1 %vm266_vm0, %v1928_v34 }
 0x484   : > { %v3284_v35 = vpop.eup %3283  ;;  %3100 = vmatpush3.msra.mxu1 %v3904_v53  ;;  %3101 = vmatprep.mubr.msk.f32.mxu1 %vm3374_vm8, %v3372_v6  ;;  %v2667_v6 = vld [vmem:[%s4055_s4] sm:$0xff]  ;;  %v2226_v53 = vld [vmem:[%s4054_s3 + $0x18] sm:$0xff] }
 0x485   : > { %v1929_v37 = vmul.f32 %v3284_v35, %v3276_v24  ;;  %2673 = vperm.xlu1 %3269, %v2667_v6  }
 0x487   : > { %3097 = vmatmul.mubr.msk.f32.vlgmr.msra.gmra.mrb[18].mxu0 %vm266_vm0, %v1929_v37 }
 0x488   : > { %v3286_v38 = vpop.eup %3285  ;;  %3106 = vmatprep.mubr.msk.f32.mxu0 %vm266_vm0, %v2223_v41 }
 0x489   : > { %v1930_v39 = vmul.f32 %v3286_v38, %v3278_v26  ;;  %2678 = vperm.xlu1 %3269, %v2668_v44  }
 0x48b   : > { %3102 = vmatmul.mubr.msk.f32.vlgmr.msra.gmra.mrb[18].mxu1 %vm266_vm0, %v1930_v39 }
 0x48c   : > { %3114 = vmatprep.mubr.msk.f32.mxu1 %vm266_vm0, %v2227_v42 }
 0x48d   : > { %2683 = vperm.xlu1 %3269, %v2669_v45  }
 0x504   : > { %v2674_v18 = vpop.permute.xlu1 %2673 }
 0x508   : > { %v2679_v39 = vpop.permute.xlu1 %2678 }
 0x552   : > { %v2000_v46 = vpop.f32.mrb[16].mxu0 }
 0x553   : > { %v3088_v47 = vpop.f32.mrb[17].mxu0  ;;  %3104 = vmatprep.subr.msk.mxu0 %vm266_vm0, %v2000_v46 }
 0x554   : > { %3105 = vmatpush3.xpose.msk.msra.mxu0 %vm266_vm0, %v2000_v46 }
 0x556   : > { %v2073_v50 = vpop.f32.mrb[16].mxu1 }
 0x557   : > { %v3093_v52 = vpop.f32.mrb[17].mxu1  ;;  %3107 = vmatmul.mubr.msk.f32.vlgmr.msra.gmra.mrb[20].mxu0 %vm266_vm0, %v2224_v48  ;;  %3112 = vmatprep.subr.msk.mxu1 %vm266_vm0, %v2073_v50 }
 0x558   : > { %3113 = vmatpush3.xpose.msk.msra.mxu1 %vm266_vm0, %v2073_v50  ;;  %3109 = vmatprep.mubr.msk.f32.mxu0 %vm266_vm0, %v2225_v49  ;;  %v2689_v49 = vpop.permute.xlu0 %2688 }
 0x55a   : > { %v2146_v56 = vpop.f32.mrb[18].mxu0 }
 0x55b   : > { %v3098_v58 = vpop.f32.mrb[19].mxu0  ;;  %3110 = vmatmul.mubr.msk.f32.gmra.mrb[22].mxu0 %vm266_vm0, %v2226_v53  ;;  %3115 = vmatmul.mubr.msk.f32.vlgmr.msra.gmra.mrb[20].mxu1 %vm266_vm0, %v2228_v54  ;;  %v2684_v54 = vpop.permute.xlu1 %2683 }
 0x55c   : > { %3120 = vmatprep.subr.msk.mxu0 %vm266_vm0, %v2146_v56  ;;  %3117 = vmatprep.mubr.msk.f32.mxu1 %vm266_vm0, %v2229_v55 }
 0x55d   : > { %3121 = vmatpush3.xpose.msk.msra.mxu0 %vm266_vm0, %v2146_v56  ;;  %3122 = vmatprep.mubr.msk.f32.mxu0 %vm266_vm0, %v2231_v57 }
 0x55e   : > { %v2219_v61 = vpop.f32.mrb[18].mxu1 }
 0x55f   : > { %v3103_v0 = vpop.f32.mrb[19].mxu1  ;;  %3118 = vmatmul.mubr.msk.f32.gmra.mrb[22].mxu1 %vm266_vm0, %v2230_v59  ;;  %3128 = vmatprep.subr.msk.mxu1 %vm266_vm0, %v2219_v61 }
 0x560   : > { %3123 = vmatmul.mubr.msk.f32.vlgmr.msra.gmra.mrb[24].mxu0 %vm266_vm0, %v2232_v60  ;;  %3129 = vmatpush3.xpose.msk.msra.mxu1 %vm266_vm0, %v2219_v61 }
 0x561   : > { %3125 = vmatprep.mubr.msk.f32.mxu0 %vm266_vm0, %v2233_v62  ;;  %3130 = vmatprep.mubr.msk.f32.mxu1 %vm266_vm0, %v2235_v63 }
 0x563   : > { %3131 = vmatmul.mubr.msk.f32.vlgmr.msra.gmra.mrb[24].mxu1 %vm266_vm0, %v2236_v1 }
 0x564   : > { %3126 = vmatmul.mubr.msk.f32.gmra.mrb[26].mxu0 %vm266_vm0, %v2234_v2  ;;  %3133 = vmatprep.mubr.msk.f32.mxu1 %vm266_vm0, %v2237_v3 }
 0x567   : > { %3134 = vmatmul.mubr.msk.f32.gmra.mrb[26].mxu1 %vm266_vm0, %v2238_v4 }
 0x62a   : > { %v3108_v5 = vpop.f32.mrb[20].mxu0 }
 0x62b   : > { %v2320_v7 = vpop.f32.mrb[21].mxu0  ;;  %v2646_v10 = vsel %vm266_vm0, %v3108_v5, 0.0 }
 0x62c   : > { %v2639_v14 = vsel %vm266_vm0, %v2320_v7, 0.0 }
 0x62e   : > { %v3111_v8 = vpop.f32.mrb[22].mxu0  ;;  %v3116_v9 = vpop.f32.mrb[20].mxu1 }
 0x62f   : > { %v2647_v11 = vsel %vm266_vm0, %v3116_v9, 0.0  ;;  %v2330_v12 = vpop.f32.mrb[23].mxu0  ;;  %v2420_v13 = vpop.f32.mrb[21].mxu1  ;;  %v2660_v20 = vsel %vm266_vm0, %v3111_v8, 0.0 }
 0x630   : > { %v2648_v15 = vadd.f32 %v2647_v11, %v2646_v10  ;;  %v2640_v16 = vsel %vm266_vm0, %v2420_v13, 0.0  ;;  %v2653_v23 = vsel %vm266_vm0, %v2330_v12, 0.0 }
 0x631   : > { %v2641_v17 = vadd.f32 %v2640_v16, %v2639_v14 }
 0x632   : > { %v3119_v19 = vpop.f32.mrb[22].mxu1 }
 0x633   : > { %v3124_v21 = vpop.f32.mrb[24].mxu0  ;;  %v2661_v22 = vsel %vm266_vm0, %v3119_v19, 0.0  ;;  %v2430_v51 = vpop.f32.mrb[23].mxu1 }
 0x634   : > { %v2649_v24 = vsel %vm266_vm0, %v3124_v21, 0.0  ;;  %v2520_v25 = vpop.f32.mrb[25].mxu0  ;;  %v2662_v26 = vadd.f32 %v2661_v22, %v2660_v20  ;;  %v2654_v27 = vsel %vm266_vm0, %v2430_v51, 0.0 }
 0x635   : > { %v2650_v28 = vadd.f32 %v2649_v24, %v2648_v15  ;;  %v2642_v29 = vsel %vm266_vm0, %v2520_v25, 0.0  ;;  %v2655_v30 = vadd.f32 %v2654_v27, %v2653_v23 }
 0x636   : > { %v2643_v36 = vadd.f32 %v2642_v29, %v2641_v17  ;;  %v3132_v31 = vpop.f32.mrb[24].mxu1 }
 0x637   : > { %v3127_v32 = vpop.f32.mrb[26].mxu0  ;;  %v2651_v33 = vsel %vm266_vm0, %v3132_v31, 0.0  ;;  %v2620_v34 = vpop.f32.mrb[25].mxu1 }
 0x638   : > { %v2663_v35 = vsel %vm266_vm0, %v3127_v32, 0.0  ;;  %v2652_v37 = vadd.f32 %v2651_v33, %v2650_v28  ;;  %v2644_v38 = vsel %vm266_vm0, %v2620_v34, 0.0  ;;  %v2530_v41 = vpop.f32.mrb[27].mxu0 }
 0x639   : > { %v2664_v42 = vadd.f32 %v2663_v35, %v2662_v26  ;;  %v2645_v6 = vadd.f32 %v2644_v38, %v2643_v36  ;;  %v2656_v43 = vsel %vm266_vm0, %v2530_v41, 0.0 }
 0x63a   : > { %v2692_v40 = vadd.f32 %v2679_v39, %v2652_v37  ;;  %v2657_v44 = vadd.f32 %v2656_v43, %v2655_v30  ;;  %v3135_v45 = vpop.f32.mrb[26].mxu1 }
 0x63b   : > { %v2691_v46 = vadd.f32 %v2674_v18, %v2645_v6  ;;  %v2665_v47 = vsel %vm266_vm0, %v3135_v45, 0.0  ;;  %v2630_v48 = vpop.f32.mrb[27].mxu1 }
 0x63c   : > { %2696 = vst.msk [vmem:[%s261_s16 + $0x8] sm:$0xff] %vm266_vm0, %v2692_v40  ;;  %v2666_v50 = vadd.f32 %v2665_v47, %v2664_v42  ;;  %v2658_v52 = vsel %vm266_vm0, %v2630_v48, 0.0 }
 0x63d   : > { %2695 = vst.msk [vmem:[%s261_s16] sm:$0xff] %vm266_vm0, %v2691_v46  ;;  %v2659_v53 = vadd.f32 %v2658_v52, %v2657_v44 }
 0x63e   : > { %v2694_v55 = vadd.f32 %v2689_v49, %v2666_v50 }
 0x63f   : > { %v2693_v56 = vadd.f32 %v2684_v54, %v2659_v53 }
 0x640   : > { %2698 = vst.msk [vmem:[%s261_s16 + $0x18] sm:$0xff] %vm266_vm0, %v2694_v55 }
 0x641   : > { %2697 = vst.msk [vmem:[%s261_s16 + $0x10] sm:$0xff] %vm266_vm0, %v2693_v56 }
 0x642 PF: > { %s18_s23 = sadd.s32 1, %s3367_s23   ;;  %s4060_s18 = smov %s3351_s19 }
 0x643   : > { %p15_p9 = scmp.ge.s32.totalorder %s18_s23, 4   ;;  %s4061_s19 = smov %s3355_s20 }
 0x644   : > { %s4062_s20 = smov %s3455_s30  ;;  %s4063_s21 = smov %s3363_s22 }
 0x645   : > { %s4064_s22 = smov %s4066_s25  ;;  %17 = sbr.rel (!%p15_p9) target bundleno = 4 (0x4), region = 88 }
 0x64c   :  { %2720 = vsyncpa [#allocation4], 1 }
 0x64d   :  { %2722 = vsyncpa [#allocation4 + $0x1], 1 }

</bundles_post_ra>
